<compile_context>
chip_gen: v7x
topology: tpu7x:2x2x1
jax: 0.10.0
libtpu: 0.0.40
codegen_flags: <defaults>
</compile_context>

<pallas_src>
import functools

import jax
import jax.numpy as jnp
from jax import lax
from jax.experimental import pallas as pl
from jax.experimental.pallas import tpu as pltpu


# =============================================================================
# Generation-aware VMEM budgets.
# =============================================================================
@functools.lru_cache(maxsize=None)
def _vmem_limit_bytes():
    """~75% of physical VMEM (96 MiB on v5e/v6e, 48 MiB on v7x), capped."""
    try:
        cap = int(pltpu.get_tpu_info().vmem_capacity_bytes)
    except Exception:
        cap = 64 * 1024 * 1024            # conservative fallback (v7x-sized)
    return int(min(100 * 1024 * 1024, (cap * 3) // 4))


# =============================================================================
# Host-side parameter preparation (done once per layer, not per forward call).
# =============================================================================
def prepare_layer_params(p, hidden_size, split_input, store_dtype=jnp.float32):
    """Fuse / transpose PyTorch-layout LSTM weights into kernel layouts.

    p: dict with PyTorch tensors
       w_ih_{f,b}: (4H, Din)  w_hh_{f,b}: (4H, H)  b_ih_{f,b}, b_hh_{f,b}: (4H,)
    split_input: True for layers >= 1 (input = [out_f | out_b], pre-split the
       input weight rows so the next layer never needs an HBM concat).
    store_dtype: dtype for matmul operands / streamed activations (fp32 or
       bf16).  Biases and all gate/cell math stay fp32.
    """
    H = hidden_size

    def prep_dir(suffix):
        w_ih = jnp.asarray(p["w_ih" + suffix], jnp.float32)       # (4H, Din)
        w_hh = jnp.asarray(p["w_hh" + suffix], jnp.float32)       # (4H, H)
        bias = (jnp.asarray(p["b_ih" + suffix], jnp.float32)
                + jnp.asarray(p["b_hh" + suffix], jnp.float32))   # (4H,)
        # Transposed so kernels do plain (rows, D) @ (D, 4H) MXU matmuls.
        return w_ih.T, w_hh.T, bias.reshape(1, 4 * H)

    wih_f, whh_f, b_f = prep_dir("_f")
    wih_b, whh_b, b_b = prep_dir("_b")

    # Fused input weight / bias: columns = [fwd i f g o | bwd i f g o] (8H).
    wih_fb = jnp.concatenate([wih_f, wih_b], axis=1).astype(store_dtype)
    bias_fb = jnp.concatenate([b_f, b_b], axis=1)                 # (1, 8H) fp32

    if split_input:
        assert wih_fb.shape[0] == 2 * H
        wih_segs = (wih_fb[:H], wih_fb[H:])   # rows for out_f / out_b halves
    else:
        wih_segs = (wih_fb,)

    return {
        "wih_segs": wih_segs,
        "bias_fb": bias_fb,
        # Dense per-direction recurrent weights (no block-diagonal zeros).
        "whh_f": whh_f.astype(store_dtype),                        # (H, 4H)
        "whh_b": whh_b.astype(store_dtype),                        # (H, 4H)
    }


# =============================================================================
# Tile-size selection helpers.
# =============================================================================
def _choose_time_tile(T, Bp, H, itemsize, budget_bytes):
    """Time tile for the recurrence kernel; caller pads T up if needed."""
    # Double-buffered per-timestep block traffic: pf + pb (4H each) + 2 outputs.
    per_step = 2 * itemsize * Bp * (4 * H + 4 * H + H + H)
    cap = max(1, min(T, budget_bytes // max(per_step, 1)))
    if T <= cap:
        return T
    # Prefer an exact divisor (no padding) if one exists in [cap/2, cap].
    for tt in range(int(cap), max(int(cap) // 2, 1) - 1, -1):
        if T % tt == 0:
            return tt
    return int(cap)                 # no good divisor -> pad T to multiple of cap


def _choose_proj_rows(rows, d_total, H, itemsize, budget_bytes):
    """Row tile for the (decoupled) projection GEMM."""
    w_bytes = 2 * itemsize * (d_total * 8 * H)        # double-buffered weights
    per_row = 2 * itemsize * (d_total + 8 * H)        # dbl-buffered in + outs
    cap = max(8, min(rows, (budget_bytes - w_bytes) // max(per_row, 1)))
    cap = min(cap, rows)
    for r in range(int(cap), 0, -1):
        if rows % r == 0:
            return r
    return rows


# =============================================================================
# Kernel 1: hoisted input projection  P = sum_i x_i @ W_i + b  (one big GEMM).
# =============================================================================
def _make_proj_kernel(n_seg):
    def kernel(*refs):
        xs = refs[:n_seg]                     # each (Rp, D_i), store_dtype
        ws = refs[n_seg:2 * n_seg]            # each (D_i, 8H), store_dtype
        b_ref = refs[2 * n_seg]               # (1, 8H) fp32
        pf_ref = refs[2 * n_seg + 1]          # (Rp, 4H)
        pb_ref = refs[2 * n_seg + 2]          # (Rp, 4H)

        acc = b_ref[...]                      # bias folded into the GEMM (fp32)
        for x_ref, w_ref in zip(xs, ws):
            acc = acc + jnp.dot(x_ref[...], w_ref[...],
                                preferred_element_type=jnp.float32)
        h4 = pf_ref.shape[1]
        pf_ref[...] = acc[:, :h4].astype(pf_ref.dtype)
        pb_ref[...] = acc[:, h4:].astype(pb_ref.dtype)
    return kernel


def _input_projection(x_segs, wih_segs, bias_fb, rows_per_block,
                      store_dtype, vmem_limit):
    """Precompute gate pre-activations for both directions over the sequence."""
    n_seg = len(x_segs)
    rows = int(x_segs[0].shape[0])             # = T_pad * Bp
    h8 = int(wih_segs[0].shape[1])
    h4 = h8 // 2
    n_blocks = rows // rows_per_block

    in_specs = (
        [pl.BlockSpec((rows_per_block, int(x.shape[1])), lambda g: (g, 0))
         for x in x_segs]
        + [pl.BlockSpec(tuple(int(d) for d in w.shape), lambda g: (0, 0))
           for w in wih_segs]
        + [pl.BlockSpec((1, h8), lambda g: (0, 0))]
    )
    out_specs = [pl.BlockSpec((rows_per_block, h4), lambda g: (g, 0)),
                 pl.BlockSpec((rows_per_block, h4), lambda g: (g, 0))]

    d_total = sum(int(x.shape[1]) for x in x_segs)
    itemsize = jnp.dtype(store_dtype).itemsize
    cost = pl.CostEstimate(
        flops=int(2 * rows * h8 * d_total),
        transcendentals=0,
        bytes_accessed=int(itemsize * (rows * d_total + rows * h8
                                       + d_total * h8) + 4 * h8),
    )

    pf, pb = pl.pallas_call(
        _make_proj_kernel(n_seg),
        out_shape=[jax.ShapeDtypeStruct((rows, h4), store_dtype)] * 2,
        grid=(n_blocks,),
        in_specs=in_specs,
        out_specs=out_specs,
        compiler_params=pltpu.CompilerParams(
            dimension_semantics=("parallel",),
            vmem_limit_bytes=vmem_limit),
        cost_estimate=cost,
    )(*x_segs, *wih_segs, bias_fb)
    return pf, pb


# =============================================================================
# Kernel 2: fused bidirectional LSTM recurrence over precomputed pre-activations.
# =============================================================================
def _make_rnn_kernel(H, T_real, needs_mask, unroll):
    def kernel(pf_ref, pb_ref, whhf_ref, whhb_ref, outf_ref, outb_ref,
               h_scr, c_scr):
        # pf_ref : (Tt, Bp, 4H)  fwd pre-activations, block g (natural order)
        # pb_ref : (Tt, Bp, 4H)  bwd pre-activations, block (n_blocks-1-g)
        # whh*   : (H, 4H)       dense per-direction recurrent weights
        # outf/outb: (Tt, Bp, H) hidden states (outb block index reversed)
        # h_scr, c_scr: (2, Bp, H) fp32 carries [0]=fwd [1]=bwd, block-boundary only
        Tt = pf_ref.shape[0]
        g = pl.program_id(0)
        n_blocks = pl.num_programs(0)

        @pl.when(g == 0)
        def _():
            h_scr[...] = jnp.zeros_like(h_scr)
            c_scr[...] = jnp.zeros_like(c_scr)

        whh_f = whhf_ref[...]                    # hoisted out of the loop
        whh_b = whhb_ref[...]
        mm_dtype = whh_f.dtype

        def lstm_cell(gates, c_in):
            i = jax.nn.sigmoid(gates[:, 0:H])
            f = jax.nn.sigmoid(gates[:, H:2 * H])
            gg = jnp.tanh(gates[:, 2 * H:3 * H])
            o = jax.nn.sigmoid(gates[:, 3 * H:4 * H])
            c = f * c_in + i * gg
            h = o * jnp.tanh(c)
            return h, c

        def step(s, carry):
            h_f, c_f, h_b, c_b = carry           # fp32 vreg-resident carries
            rec_f = jnp.dot(h_f.astype(mm_dtype), whh_f,
                            preferred_element_type=jnp.float32)   # (Bp, 4H)
            rec_b = jnp.dot(h_b.astype(mm_dtype), whh_b,
                            preferred_element_type=jnp.float32)   # (Bp, 4H)
            gates_f = pf_ref[s].astype(jnp.float32) + rec_f
            gates_b = pb_ref[Tt - 1 - s].astype(jnp.float32) + rec_b

            h_f, c_f = lstm_cell(gates_f, c_f)
            h_b, c_b = lstm_cell(gates_b, c_b)

            if needs_mask:
                # Time padding: zero the state at padded positions so the
                # backward pass enters the real data with a zero state.
                t_f = g * Tt + s
                t_b = (n_blocks - 1 - g) * Tt + (Tt - 1 - s)
                keep_f = (t_f < T_real).astype(jnp.float32)
                keep_b = (t_b < T_real).astype(jnp.float32)
                h_f = h_f * keep_f
                c_f = c_f * keep_f
                h_b = h_b * keep_b
                c_b = c_b * keep_b

            outf_ref[s] = h_f.astype(outf_ref.dtype)
            outb_ref[Tt - 1 - s] = h_b.astype(outb_ref.dtype)
            return (h_f, c_f, h_b, c_b)

        init = (h_scr[0], c_scr[0], h_scr[1], c_scr[1])
        h_f, c_f, h_b, c_b = lax.fori_loop(
            0, Tt, step, init, unroll=max(1, min(int(unroll), Tt)))
        # Commit carries once per grid block (persist to next time block).
        h_scr[0] = h_f
        c_scr[0] = c_f
        h_scr[1] = h_b
        c_scr[1] = c_b
    return kernel


def _birnn_recurrence(pf, pb, whh_f, whh_b, T_real, T_pad, Bp, H, Tt,
                      store_dtype, unroll, vmem_limit):
    n_blocks = T_pad // Tt
    pf3 = pf.reshape(T_pad, Bp, 4 * H)
    pb3 = pb.reshape(T_pad, Bp, 4 * H)

    def fwd_idx(g):
        return (g, 0, 0)

    def rev_idx(g):
        return (n_blocks - 1 - g, 0, 0)

    itemsize = jnp.dtype(store_dtype).itemsize
    cost = pl.CostEstimate(
        flops=int(2 * T_pad * Bp * H * 4 * H * 2 + 40 * T_pad * Bp * H),
        transcendentals=int(10 * T_pad * Bp * H),
        bytes_accessed=int(itemsize * (2 * T_pad * Bp * 4 * H
                                       + 2 * T_pad * Bp * H
                                       + 2 * H * 4 * H)),
    )

    out_f, out_b = pl.pallas_call(
        _make_rnn_kernel(H, T_real, T_pad != T_real, unroll),
        out_shape=[jax.ShapeDtypeStruct((T_pad, Bp, H), store_dtype)] * 2,
        grid=(n_blocks,),
        in_specs=[
            pl.BlockSpec((Tt, Bp, 4 * H), fwd_idx),      # fwd pre-activations
            pl.BlockSpec((Tt, Bp, 4 * H), rev_idx),      # bwd pre-activations
            pl.BlockSpec((H, 4 * H), lambda g: (0, 0)),  # whh fwd (dense)
            pl.BlockSpec((H, 4 * H), lambda g: (0, 0)),  # whh bwd (dense)
        ],
        out_specs=[
            pl.BlockSpec((Tt, Bp, H), fwd_idx),          # fwd hidden states
            pl.BlockSpec((Tt, Bp, H), rev_idx),          # bwd hidden states
        ],
        scratch_shapes=[
            pltpu.VMEM((2, Bp, H), jnp.float32),         # h carry [fwd, bwd]
            pltpu.VMEM((2, Bp, H), jnp.float32),         # c carry [fwd, bwd]
        ],
        compiler_params=pltpu.CompilerParams(
            dimension_semantics=("arbitrary",),          # sequential recurrence
            vmem_limit_bytes=vmem_limit),
        cost_estimate=cost,
    )(pf3, pb3, whh_f, whh_b)
    return out_f, out_b


# =============================================================================
# Wrapper: StackedBRNN forward (unpadded path).
# =============================================================================
def stacked_brnn_forward(x, x_mask, prepared_layers, hidden_size,
                         concat_layers=False, time_tile=None, unroll=4):
    """x: (B, T, Din), x_mask: (B, T). Returns (B, T, 2H) or (B, T, L*2H)."""
    # TODO(synk): `_forward_padded` (length-sort + pack_padded_sequence) is not
    # implemented; a mask traced inside jit cannot be inspected, so that case
    # falls back to the unpadded path (same caveat as the original review).
    if x_mask is not None:
        try:
            mask_sum = int(jnp.sum(x_mask))
        except jax.errors.ConcretizationTypeError:
            mask_sum = None       # traced inside jit -> assume unpadded path
        if mask_sum not in (None, 0):
            raise NotImplementedError(
                "Only the unpadded (all-zero mask) StackedBRNN path is "
                "implemented in the Pallas kernel.")

    H = hidden_size
    B, T, Din = x.shape
    store_dtype = jnp.dtype(prepared_layers[0]["whh_f"].dtype)
    itemsize = store_dtype.itemsize
    vmem_limit = _vmem_limit_bytes()
    tile_budget = vmem_limit // 4

    Bp = max(8, ((B + 7) // 8) * 8)            # sublane-aligned batch
    if time_tile is not None:
        Tt = int(time_tile)
    else:
        Tt = _choose_time_tile(T, Bp, H, itemsize, tile_budget)
    Tt = max(1, min(Tt, T))
    T_pad = ((T + Tt - 1) // Tt) * Tt          # pad T instead of shrinking Tt

    x = jnp.asarray(x, jnp.float32)
    if Bp != B:
        x = jnp.pad(x, ((0, Bp - B), (0, 0), (0, 0)))
    if T_pad != T:
        x = jnp.pad(x, ((0, 0), (0, T_pad - T), (0, 0)))
    # Time-major, rows flattened as (t * Bp + b).
    x2d = jnp.transpose(x, (1, 0, 2)).reshape(T_pad * Bp, Din).astype(store_dtype)

    segs = (x2d,)
    layer_outputs = []
    for prep in prepared_layers:
        d_total = sum(int(s.shape[1]) for s in segs)
        # Projection row tile decoupled from the recurrence time tile.
        rows_pb = _choose_proj_rows(T_pad * Bp, d_total, H, itemsize, tile_budget)
        pf, pb = _input_projection(list(segs), list(prep["wih_segs"]),
                                   prep["bias_fb"], rows_pb,
                                   store_dtype, vmem_limit)
        out_f, out_b = _birnn_recurrence(pf, pb, prep["whh_f"], prep["whh_b"],
                                         T, T_pad, Bp, H, Tt,
                                         store_dtype, unroll, vmem_limit)
        layer_outputs.append((out_f, out_b))
        # Next layer consumes the two halves separately (no HBM concat).
        segs = (out_f.reshape(T_pad * Bp, H), out_b.reshape(T_pad * Bp, H))

    if concat_layers:
        pieces = [h for of_, ob_ in layer_outputs for h in (of_, ob_)]
        out_tb = jnp.concatenate(pieces, axis=-1)
    else:
        of_, ob_ = layer_outputs[-1]
        out_tb = jnp.concatenate([of_, ob_], axis=-1)
    out = jnp.transpose(out_tb, (1, 0, 2))[:B, :T]       # (B, T, ·)
    return out.astype(jnp.float32)


# =============================================================================
# Pure-JAX reference (lax.scan LSTM, PyTorch layout) for correctness checking.
# =============================================================================
def _ref_lstm_direction(x_tbd, w_ih, w_hh, b_ih, b_hh):
    T, B, Din = x_tbd.shape
    H = w_hh.shape[1]
    b = b_ih + b_hh

    def step(carry, x_t):
        h, c = carry
        gates = x_t @ w_ih.T + h @ w_hh.T + b
        i = jax.nn.sigmoid(gates[:, 0:H])
        f = jax.nn.sigmoid(gates[:, H:2 * H])
        g = jnp.tanh(gates[:, 2 * H:3 * H])
        o = jax.nn.sigmoid(gates[:, 3 * H:4 * H])
        c_new = f * c + i * g
        h_new = o * jnp.tanh(c_new)
        return (h_new, c_new), h_new

    init = (jnp.zeros((B, H), jnp.float32), jnp.zeros((B, H), jnp.float32))
    _, hs = lax.scan(step, init, x_tbd.astype(jnp.float32))
    return hs


def _ref_forward(x, layer_params, concat_layers=False):
    cur = jnp.transpose(x, (1, 0, 2))
    outputs = []
    for p in layer_params:
        fwd = _ref_lstm_direction(cur, p["w_ih_f"], p["w_hh_f"],
                                  p["b_ih_f"], p["b_hh_f"])
        bwd = jnp.flip(
            _ref_lstm_direction(jnp.flip(cur, 0), p["w_ih_b"], p["w_hh_b"],
                                p["b_ih_b"], p["b_hh_b"]), 0)
        cur = jnp.concatenate([fwd, bwd], axis=-1)
        outputs.append(cur)
    out = jnp.concatenate(outputs, axis=-1) if concat_layers else outputs[-1]
    return jnp.transpose(out, (1, 0, 2))


# =============================================================================
# Deterministic parameter init (PyTorch LSTM default: U(-1/sqrt(H), 1/sqrt(H))).
# =============================================================================
def init_params(key, input_size, hidden_size, num_layers):
    params = []
    bound = 1.0 / (hidden_size ** 0.5)
    for layer in range(num_layers):
        din = input_size if layer == 0 else 2 * hidden_size
        keys = jax.random.split(jax.random.fold_in(key, layer), 8)
        u = lambda k, shape: jax.random.uniform(
            k, shape, jnp.float32, minval=-bound, maxval=bound)
        params.append({
            "w_ih_f": u(keys[0], (4 * hidden_size, din)),
            "w_hh_f": u(keys[1], (4 * hidden_size, hidden_size)),
            "b_ih_f": u(keys[2], (4 * hidden_size,)),
            "b_hh_f": u(keys[3], (4 * hidden_size,)),
            "w_ih_b": u(keys[4], (4 * hidden_size, din)),
            "w_hh_b": u(keys[5], (4 * hidden_size, hidden_size)),
            "b_ih_b": u(keys[6], (4 * hidden_size,)),
            "b_hh_b": u(keys[7], (4 * hidden_size,)),
        })
    return params


if __name__ == "__main__":
    B, T = 2, 8
    INPUT_SIZE, HIDDEN_SIZE, NUM_LAYERS = 32, 32, 2

    key = jax.random.PRNGKey(0)
    k_x, k_p = jax.random.split(key)
    x = jax.random.normal(k_x, (B, T, INPUT_SIZE), jnp.float32)
    x_mask = jnp.zeros((B, T), jnp.int32)        # all-zero mask -> unpadded path

    raw_params = init_params(k_p, INPUT_SIZE, HIDDEN_SIZE, NUM_LAYERS)

    # Validate fp32 (tight tol) and bf16-storage (loose tol) modes, both concat
    # modes, and several time tiles:
    #   None -> single block, 4 -> multi-block carry persistence,
    #   3    -> T padded to 9, exercises the padded-time validity mask.
    for store_dtype, atol in ((jnp.float32, 2e-4), (jnp.bfloat16, 7.5e-2)):
        prepared = [prepare_layer_params(p, HIDDEN_SIZE, split_input=(i > 0),
                                         store_dtype=store_dtype)
                    for i, p in enumerate(raw_params)]
        for concat_layers in (False, True):
            ref = _ref_forward(x, raw_params, concat_layers=concat_layers)
            ref = jax.block_until_ready(ref)
            for time_tile in (None, 4, 3):
                out = stacked_brnn_forward(x, x_mask, prepared, HIDDEN_SIZE,
                                           concat_layers=concat_layers,
                                           time_tile=time_tile)
                out = jax.block_until_ready(out)
                expected_dim = 2 * HIDDEN_SIZE * (NUM_LAYERS if concat_layers else 1)
                assert out.shape == (B, T, expected_dim), out.shape
                err = float(jnp.max(jnp.abs(out - ref)))
                assert err <= atol, (str(store_dtype), concat_layers,
                                     time_tile, err)

    print("KERNEL_OK")
</pallas_src>

<mosaic_0001>
module attributes {stable_mosaic.version = 11 : i64} {
  func.func @kernel(%arg0: i32, %arg1: memref<64x32xf32, #tpu.memory_space<vmem>>, %arg2: memref<32x256xf32, #tpu.memory_space<vmem>>, %arg3: memref<1x256xf32, #tpu.memory_space<vmem>>, %arg4: memref<64x128xf32, #tpu.memory_space<vmem>>, %arg5: memref<64x128xf32, #tpu.memory_space<vmem>>) attributes {dimension_semantics = [#tpu.dimension_semantics<parallel>], iteration_bounds = array<i64: 1>, scalar_prefetch = 0 : i64, scratch_operands = 0 : i64, tpu.core_type = #tpu.core_type<tc>, window_params = [{transform_indices = @transform_0, window_bounds = array<i64: 64, 32>}, {pipeline_mode = #tpu.pipeline_mode<synchronous>, transform_indices = @transform_1, window_bounds = array<i64: 32, 256>}, {pipeline_mode = #tpu.pipeline_mode<synchronous>, transform_indices = @transform_2, window_bounds = array<i64: 1, 256>}, {transform_indices = @transform_3, window_bounds = array<i64: 64, 128>}, {transform_indices = @transform_4, window_bounds = array<i64: 64, 128>}]} {
    %c0 = arith.constant 0 : index
    %c0_0 = arith.constant 0 : index
    %0 = vector.load %arg3[%c0, %c0_0] : memref<1x256xf32, #tpu.memory_space<vmem>>, vector<1x256xf32>
    %c0_1 = arith.constant 0 : index
    %c0_2 = arith.constant 0 : index
    %1 = vector.load %arg1[%c0_1, %c0_2] : memref<64x32xf32, #tpu.memory_space<vmem>>, vector<64x32xf32>
    %c0_3 = arith.constant 0 : index
    %c0_4 = arith.constant 0 : index
    %2 = vector.load %arg2[%c0_3, %c0_4] : memref<32x256xf32, #tpu.memory_space<vmem>>, vector<32x256xf32>
    %cst = arith.constant dense<0.000000e+00> : vector<64x256xf32>
    %3 = tpu.matmul %1, %2, %cst {dimension_numbers = #tpu.dot_dimension_numbers<[1], [0], [0], [1], [0, 0, 1, 1], [], []>} : vector<64x32xf32>, vector<32x256xf32>, vector<64x256xf32> -> vector<64x256xf32>
    %4 = vector.broadcast %0 : vector<1x256xf32> to vector<64x256xf32>
    %5 = arith.addf %4, %3 : vector<64x256xf32>
    %6 = vector.extract_strided_slice %5 {offsets = [0, 0], sizes = [64, 128], strides = [1, 1]} : vector<64x256xf32> to vector<64x128xf32>
    %c0_5 = arith.constant 0 : index
    %c0_6 = arith.constant 0 : index
    %7 = vector.load %arg4[%c0_5, %c0_6] : memref<64x128xf32, #tpu.memory_space<vmem>>, vector<64x128xf32>
    tpu.vector_store %arg4[%c0_5, %c0_6], %6 {strides = array<i32>} : memref<64x128xf32, #tpu.memory_space<vmem>>, vector<64x128xf32>,
    %8 = vector.extract_strided_slice %5 {offsets = [0, 128], sizes = [64, 128], strides = [1, 1]} : vector<64x256xf32> to vector<64x128xf32>
    %c0_7 = arith.constant 0 : index
    %c0_8 = arith.constant 0 : index
    %9 = vector.load %arg5[%c0_7, %c0_8] : memref<64x128xf32, #tpu.memory_space<vmem>>, vector<64x128xf32>
    tpu.vector_store %arg5[%c0_7, %c0_8], %8 {strides = array<i32>} : memref<64x128xf32, #tpu.memory_space<vmem>>, vector<64x128xf32>,
    return
  }
  func.func @transform_0(%arg0: i32) -> (i32, i32) {
    %c0_i32 = arith.constant 0 : i32
    %c0_i32_0 = arith.constant 0 : i32
    return %arg0, %c0_i32 : i32, i32
  }
  func.func @transform_1(%arg0: i32) -> (i32, i32) {
    %c0_i32 = arith.constant 0 : i32
    %c0_i32_0 = arith.constant 0 : i32
    %c0_i32_1 = arith.constant 0 : i32
    return %c0_i32, %c0_i32_0 : i32, i32
  }
  func.func @transform_2(%arg0: i32) -> (i32, i32) {
    %c0_i32 = arith.constant 0 : i32
    %c0_i32_0 = arith.constant 0 : i32
    %c0_i32_1 = arith.constant 0 : i32
    return %c0_i32, %c0_i32_0 : i32, i32
  }
  func.func @transform_3(%arg0: i32) -> (i32, i32) {
    %c0_i32 = arith.constant 0 : i32
    %c0_i32_0 = arith.constant 0 : i32
    return %arg0, %c0_i32 : i32, i32
  }
  func.func @transform_4(%arg0: i32) -> (i32, i32) {
    %c0_i32 = arith.constant 0 : i32
    %c0_i32_0 = arith.constant 0 : i32
    return %arg0, %c0_i32 : i32, i32
  }
}

</mosaic_0001>

<bundles_post_ra>
// kernel: tpu_custom_call.1
= control target key start
LH: loop header
LB: loop body
LE: loop exit
PB: predicated region body
PF: predicated region fallthrough
CT: control target
= control target key end

     0   :  { %10 = vsyncpa [#allocation3], 0  ;;  %v321_v7 = vmov 0.0   ;;  %s448_s0 = inlined_call_operand.vmem [shape: f32[64,32], index: 0, kind: input, shape index: {}]   ;;  %s449_s1 = inlined_call_operand.vmem [shape: f32[32,256], index: 1, kind: input, shape index: {}]   ;;  %s450_s2 = inlined_call_operand.vmem [shape: f32[1,256], index: 2, kind: input, shape index: {}]   ;;  %s451_s3 = inlined_call_operand.hbm [shape: f32[64,128], index: 3, kind: output, shape index: {0}]   ;;  %s452_s4 = inlined_call_operand.hbm [shape: f32[64,128], index: 4, kind: output, shape index: {1}]  }
   0x1   :  { %v28_v0 = vld [vmem:[%s449_s1 + $0x8] sm:$0xff]  ;;  %v30_v1 = vld [vmem:[%s449_s1 + $0x18] sm:$0xff]  ;;  %v27_v2 = vld [vmem:[%s449_s1] sm:$0xff]  ;;  %124 = vmatprep.mubr.f32.mxu0 %v321_v7  ;;  %148 = vmatprep.mubr.f32.mxu1 %v321_v7 }
   0x2   :  { %v256_v3 = vpack.c.bf16 %v30_v1, %v28_v0  ;;  %v29_v4 = vld [vmem:[%s449_s1 + $0x10] sm:$0xff]  ;;  %v32_v5 = vld [vmem:[%s449_s1 + $0x28] sm:$0xff]  ;;  %v34_v6 = vld [vmem:[%s449_s1 + $0x38] sm:$0xff] }
   0x3   :  { %v258_v8 = vpack.c.bf16 %v29_v4, %v27_v2  ;;  %v260_v9 = vpack.c.bf16 %v34_v6, %v32_v5  ;;  %v31_v10 = vld [vmem:[%s449_s1 + $0x20] sm:$0xff]  ;;  %v33_v11 = vld [vmem:[%s449_s1 + $0x30] sm:$0xff] }
   0x4   :  { %257 = vmatprep.subr.bf16.mxu0 %v256_v3  ;;  %264 = vmatprep.subr.bf16.mxu1 %v256_v3  ;;  %v262_v12 = vpack.c.bf16 %v33_v11, %v31_v10 }
   0x5   :  { %259 = vmatpush1.bf16.msra.mxu0 %v258_v8  ;;  %266 = vmatpush1.bf16.msra.mxu1 %v258_v8 }
   0x6   :  { %261 = vmatprep.subr.bf16.mxu0 %v260_v9  ;;  %265 = vmatprep.subr.bf16.mxu1 %v260_v9 }
   0x7   :  { %11 = vsyncpa [#allocation5], 0  ;;  %v19_v13 = vld [vmem:[%s448_s0] sm:$0xff]  ;;  %vm35_vm0 = vcmask 261120   ;;  %v20_v15 = vld [vmem:[%s448_s0 + $0x8] sm:$0xff]  ;;  %v174_v21 = vlaneseq  ;;  %s323_s22 = smov [#allocation4]  }
   0x8   :  { %v23_v14 = vld [vmem:[%s448_s0 + $0x20] sm:$0xff]  ;;  %v24_v16 = vld [vmem:[%s448_s0 + $0x28] sm:$0xff]  ;;  %v21_v17 = vld [vmem:[%s448_s0 + $0x10] sm:$0xff]  ;;  %s233_s23 = sshll.u32 %s323_s22, 4  ;;  %s412_s23 = int_to_ptr.vmem [resolvable:$true] %s233_s23 }
   0x9   :  { %263 = vmatpush1.bf16.msra.mxu0 %v262_v12  ;;  %267 = vmatpush1.bf16.msra.mxu1 %v262_v12  ;;  %v25_v18 = vld [vmem:[%s448_s0 + $0x30] sm:$0xff]  ;;  %v22_v19 = vld [vmem:[%s448_s0 + $0x18] sm:$0xff]  ;;  %v175_v22 = vshrl.u32 %v174_v21, 7  ;;  %v18_v24 = vld [vmem:[%s450_s2] sm:$0x3] }
   0xa   :  { %v26_v20 = vld [vmem:[%s448_s0 + $0x38] sm:$0xff]  ;;  %s322_s0 = smov [#allocation2]  }
   0xb   :  { %v176_v23 = vsub.s32 0, %v175_v22  ;;  %v180_v25 = vsub.s32 1, %v175_v22  ;;  %s221_s2 = sshll.u32 %s322_s0, 4  ;;  %s410_s2 = int_to_ptr.vmem [resolvable:$true] %s221_s2 }
   0xc   :  { %248 = vmatmul.mubr.msk.f32.vlgmr.msra.gmra.mrb[0].mxu0 %vm35_vm0, %v19_v13  ;;  %252 = vmatmul.mubr.msk.f32.vlgmr.msra.gmra.mrb[0].mxu1 %vm35_vm0, %v23_v14  ;;  %s273_s24 = scalar_lea.vmem %s410_s2, 1024  ;;  %p278_p1 = scmp.lt.s32.totalorder %s410_s2, %s410_s2 }
   0xd   :  { %130 = vmatprep.mubr.f32.mxu0 %v321_v7  ;;  %154 = vmatprep.mubr.f32.mxu1 %v321_v7  ;;  %v177_v26 = vrot.slane %v18_v24, %v176_v23  ;;  %v181_v27 = vrot.slane %v18_v24, %v180_v25  ;;  %p274_p0 = scmp.ne.s32.totalorder %s410_s2, %s273_s24  ;;  %p279_p2 = scmp.lt.s32.totalorder %s273_s24, %s273_s24 }
   0xf   :  { %p280_p3 = por %p279_p2, %p278_p1 }
  0x10   :  { %249 = vmatmul.mubr.msk.f32.gmra.mrb[2].mxu0 %vm35_vm0, %v20_v15  ;;  %253 = vmatmul.mubr.msk.f32.gmra.mrb[2].mxu1 %vm35_vm0, %v24_v16 }
  0x11   :  { %136 = vmatprep.mubr.f32.mxu0 %v321_v7  ;;  %160 = vmatprep.mubr.f32.mxu1 %v321_v7  ;;  %p281_p4 = pnand %p280_p3, %p274_p0 }
  0x14   :  { %250 = vmatmul.mubr.msk.f32.gmra.mrb[4].mxu0 %vm35_vm0, %v21_v17  ;;  %254 = vmatmul.mubr.msk.f32.gmra.mrb[4].mxu1 %vm35_vm0, %v25_v18 }
  0x15   :  { %142 = vmatprep.mubr.f32.mxu0 %v321_v7  ;;  %166 = vmatprep.mubr.f32.mxu1 %v321_v7 }
  0x18   :  { %251 = vmatmul.mubr.msk.f32.gmra.mrb[6].mxu0 %vm35_vm0, %v22_v19  ;;  %255 = vmatmul.mubr.msk.f32.gmra.mrb[6].mxu1 %vm35_vm0, %v26_v20 }
  0xdf   :  { %v126_v28 = vpop.f32.mrb[0].mxu0  ;;  %v150_v29 = vpop.f32.mrb[0].mxu1 }
  0xe0   :  { %v184_v30 = vadd.f32 %v177_v26, %v126_v28  ;;  %v192_v31 = vadd.f32 %v177_v26, %v150_v29  ;;  %v128_v32 = vpop.f32.mrb[1].mxu0  ;;  %v152_v33 = vpop.f32.mrb[1].mxu1 }
  0xe1   :  { %v185_v34 = vadd.f32 %v181_v27, %v128_v32  ;;  %v193_v35 = vadd.f32 %v181_v27, %v152_v33 }
  0xe2   :  { %200 = vst [vmem:[#allocation2] sm:$0xff] %v184_v30  ;;  %204 = vst [vmem:[#allocation2 + $0x20] sm:$0xff] %v192_v31 }
  0xe3   :  { %208 = vst [vmem:[#allocation4] sm:$0xff] %v185_v34  ;;  %212 = vst [vmem:[#allocation4 + $0x20] sm:$0xff] %v193_v35  ;;  %v132_v36 = vpop.f32.mrb[2].mxu0  ;;  %v156_v37 = vpop.f32.mrb[2].mxu1 }
  0xe4   :  { %v186_v38 = vadd.f32 %v177_v26, %v132_v36  ;;  %v194_v39 = vadd.f32 %v177_v26, %v156_v37  ;;  %v134_v40 = vpop.f32.mrb[3].mxu0  ;;  %v158_v41 = vpop.f32.mrb[3].mxu1 }
  0xe5   :  { %v187_v42 = vadd.f32 %v181_v27, %v134_v40  ;;  %v195_v43 = vadd.f32 %v181_v27, %v158_v41 }
  0xe6   :  { %201 = vst [vmem:[#allocation2 + $0x8] sm:$0xff] %v186_v38  ;;  %205 = vst [vmem:[#allocation2 + $0x28] sm:$0xff] %v194_v39 }
  0xe7   :  { %209 = vst [vmem:[#allocation4 + $0x8] sm:$0xff] %v187_v42  ;;  %213 = vst [vmem:[#allocation4 + $0x28] sm:$0xff] %v195_v43  ;;  %v138_v44 = vpop.f32.mrb[4].mxu0  ;;  %v162_v45 = vpop.f32.mrb[4].mxu1 }
  0xe8   :  { %v188_v46 = vadd.f32 %v177_v26, %v138_v44  ;;  %v196_v47 = vadd.f32 %v177_v26, %v162_v45  ;;  %v140_v48 = vpop.f32.mrb[5].mxu0  ;;  %v164_v49 = vpop.f32.mrb[5].mxu1 }
  0xe9   :  { %v189_v50 = vadd.f32 %v181_v27, %v140_v48  ;;  %v197_v51 = vadd.f32 %v181_v27, %v164_v49 }
  0xea   :  { %202 = vst [vmem:[#allocation2 + $0x10] sm:$0xff] %v188_v46  ;;  %206 = vst [vmem:[#allocation2 + $0x30] sm:$0xff] %v196_v47 }
  0xeb   :  { %210 = vst [vmem:[#allocation4 + $0x10] sm:$0xff] %v189_v50  ;;  %214 = vst [vmem:[#allocation4 + $0x30] sm:$0xff] %v197_v51  ;;  %v144_v52 = vpop.f32.mrb[6].mxu0  ;;  %v168_v53 = vpop.f32.mrb[6].mxu1 }
  0xec   :  { %v190_v54 = vadd.f32 %v177_v26, %v144_v52  ;;  %v198_v55 = vadd.f32 %v177_v26, %v168_v53  ;;  %v146_v56 = vpop.f32.mrb[7].mxu0  ;;  %v170_v57 = vpop.f32.mrb[7].mxu1 }
  0xed   :  { %v191_v58 = vadd.f32 %v181_v27, %v146_v56  ;;  %v199_v59 = vadd.f32 %v181_v27, %v170_v57 }
  0xee   :  { %203 = vst [vmem:[#allocation2 + $0x18] sm:$0xff] %v190_v54  ;;  %207 = vst [vmem:[#allocation2 + $0x38] sm:$0xff] %v198_v55 }
  0xef   :  { %211 = vst [vmem:[#allocation4 + $0x18] sm:$0xff] %v191_v58  ;;  %215 = vst [vmem:[#allocation4 + $0x38] sm:$0xff] %v199_v59 }
  0xf0   :  { %284 = shalt.err (!%p281_p4)
}
  0xf1   :  { %s285_s27 = scalar_lea.hbm %s451_s3, 1024 }
  0xf2   :  { %p286_p5 = scmp.ne.s32.totalorder %s451_s3, %s285_s27  ;;  %p289_p6 = scmp.lt.u32.totalorder %s285_s27, %s451_s3 }
  0xf4   :  { %p291_p7 = pnand %p289_p6, %p286_p5 }
  0xf6   :  { %294 = shalt.err (!%p291_p7)
}
  0xf7   :  { %s324_s6 = smov 128   ;;  %s325_s7 = smov 8  }
  0xf8   :  { %227 = dma.vmem_to_hbm [thread:$0]  %s410_s2, 1024, %s451_s3, [#allocation3], %s324_s6, %s324_s6, %s325_s7  }
  0xf9   :  { %s295_s9 = scalar_lea.vmem %s412_s23, 1024  ;;  %p300_p9 = scmp.lt.s32.totalorder %s412_s23, %s412_s23 }
  0xfa   :  { %p296_p8 = scmp.ne.s32.totalorder %s412_s23, %s295_s9  ;;  %p301_p10 = scmp.lt.s32.totalorder %s295_s9, %s295_s9 }
  0xfc   :  { %p302_p11 = por %p301_p10, %p300_p9 }
  0xfe   :  { %p303_p12 = pnand %p302_p11, %p296_p8 }
 0x100   :  { %306 = shalt.err (!%p303_p12)
}
 0x101   :  { %s307_s12 = scalar_lea.hbm %s452_s4, 1024 }
 0x102   :  { %p308_p13 = scmp.ne.s32.totalorder %s452_s4, %s307_s12  ;;  %p311_p0 = scmp.lt.u32.totalorder %s307_s12, %s452_s4 }
 0x104   :  { %p313_p1 = pnand %p311_p0, %p308_p13 }
 0x106   :  { %316 = shalt.err (!%p313_p1)
}
 0x107   :  { %239 = dma.vmem_to_hbm [thread:$0]  %s412_s23, 1024, %s452_s4, [#allocation5], %s324_s6, %s324_s6, %s325_s7  }
 0x108   :  { %317 = dma.done.wait [#allocation3], 1024  }
 0x109   :  { %318 = vsyncadd [#allocation3], 4294966272 }
 0x10a   :  { %319 = dma.done.wait [#allocation5], 1024  }
 0x10b   :  { %320 = vsyncadd [#allocation5], 4294966272 }
 0x10c   :  { %246 = vsyncpa [#allocation3], 1 }
 0x10d   :  { %247 = vsyncpa [#allocation5], 1 }

</bundles_post_ra>
